<compile_context>
chip_gen: v7x
topology: tpu7x:2x2x1
jax: 0.10.0
libtpu: 0.0.40
codegen_flags: <defaults>
</compile_context>

<pallas_src>
import functools

import jax
import jax.numpy as jnp
from jax import lax
from jax.experimental import pallas as pl
from jax.experimental.pallas import tpu as pltpu


def resblock_kernel(x_ref, w_ref, b_ref, o_ref, *, tn):
    # x_ref: (tm, H)  input tile (matmul operand; also residual source)
    # w_ref: (tn, H)  weight slab in PyTorch [out, in] layout
    # b_ref: (1, tn)  bias slab
    # o_ref: (tm, tn) output tile
    j = pl.program_id(1)

    # y = x @ W^T restricted to this N slab; f32 accumulation on the MXU.
    y = lax.dot_general(
        x_ref[...], w_ref[...],
        dimension_numbers=(((1,), (1,)), ((), ())),
        preferred_element_type=jnp.float32,
    )
    y = y + b_ref[...].astype(jnp.float32)

    # SiLU(y) = y * sigmoid(y) = y / (1 + exp(-y)); exp + reciprocal -> EUP.
    e = jnp.exp(-y)
    act = y * pl.reciprocal(1.0 + e, approx=True)

    # Residual: slice the matching N-slab out of the VMEM-resident x tile
    # (no extra HBM stream).  Offsets are tn-aligned (tn is 128-multiple or H).
    start = j * tn
    if tn % 128 == 0:
        start = pl.multiple_of(start, 128)
    xr = x_ref[:, pl.ds(start, tn)]

    o_ref[...] = (xr.astype(jnp.float32) + act).astype(o_ref.dtype)


def _pick_tiles(M, H, xdb, wdb, ob, vmem_budget):
    """Choose (tm, tn) so the double-buffered working set fits the budget."""
    # tn: largest of {512, 256, 128} that divides H, else full H.
    if H <= 512:
        tn = H
    else:
        tn = next((t for t in (512, 256, 128) if H % t == 0), H)

    def est(tm, tn):
        # 2x for default double-buffering of every pipelined block.
        return 2 * (tm * H * xdb + tn * H * wdb + tm * tn * ob + tn * 4)

    # tm: biggest of {512, 256, 128} <= M that fits; small M -> tm = M.
    cands = [t for t in (512, 256, 128) if t <= M] or [M]
    for tm in cands:
        if est(tm, tn) <= vmem_budget:
            return tm, tn
    return cands[-1], tn


def resblock(x, weight, bias, *, tm=None, tn=None):
    """x: [M, H] tokens-major; weight: [H, H] PyTorch [out, in]; bias: [H]."""
    M, H = x.shape
    assert weight.shape == (H, H)
    assert bias.shape == (H,)

    xdb = jnp.dtype(x.dtype).itemsize
    wdb = jnp.dtype(weight.dtype).itemsize
    ob = xdb
    bdb = jnp.dtype(bias.dtype).itemsize

    vmem_budget = 40 * 2**20  # conservative: fits v7x's 64 MiB with headroom
    atm, atn = _pick_tiles(M, H, xdb, wdb, ob, vmem_budget)
    if tm is None:
        tm = atm
    if tn is None:
        tn = atn
    est = 2 * (tm * H * xdb + tn * H * wdb + tm * tn * ob + tn * bdb)

    # Layout constraints: last-two-dims of each block must be (8,128)-aligned
    # or equal to the full array dim.
    assert tm == M or tm % 8 == 0, "tm must equal M or be a multiple of 8"
    assert tn == H or (tn % 128 == 0 and H % tn == 0), \
        "tn must equal H or be a 128-multiple divisor of H"

    grid = (pl.cdiv(M, tm), H // tn)
    b2 = bias.reshape(1, H)  # 2D for TPU layout

    cost = pl.CostEstimate(
        flops=2 * M * H * H,
        transcendentals=M * H,
        bytes_accessed=H * H * wdb + M * H * (xdb + ob) + H * bdb,
    )

    kernel = functools.partial(resblock_kernel, tn=tn)

    return pl.pallas_call(
        kernel,
        out_shape=jax.ShapeDtypeStruct((M, H), x.dtype),
        grid_spec=pltpu.PrefetchScalarGridSpec(
            num_scalar_prefetch=0,
            grid=grid,
            in_specs=[
                pl.BlockSpec((tm, H), lambda i, j: (i, 0)),   # x tile (matmul + residual)
                pl.BlockSpec((tn, H), lambda i, j: (j, 0)),   # W [out, in] slab
                pl.BlockSpec((1, tn), lambda i, j: (0, j)),   # bias slab
            ],
            out_specs=pl.BlockSpec((tm, tn), lambda i, j: (i, j)),
        ),
        compiler_params=pltpu.CompilerParams(
            dimension_semantics=("parallel", "parallel"),
            vmem_limit_bytes=int(min(48 * 2**20, max(32 * 2**20, est + 8 * 2**20))),
        ),
        cost_estimate=cost,
    )(x, weight, b2)


def resblock_ref(x, weight, bias):
    y = x @ weight.T + bias
    return x + y * jax.nn.sigmoid(y)


if __name__ == "__main__":
    key = jax.random.PRNGKey(0)
    batch, seq, hidden = 2, 8, 256
    k_x, k_w, k_b = jax.random.split(key, 3)

    x3 = jax.random.normal(k_x, (batch, seq, hidden), dtype=jnp.float32)
    # Synthetic parameters in PyTorch Linear layout: [out, in]
    weight = jax.random.normal(k_w, (hidden, hidden), dtype=jnp.float32) * 0.02
    bias = jax.random.normal(k_b, (hidden,), dtype=jnp.float32) * 0.01

    x = x3.reshape(batch * seq, hidden)  # tokens-major layout
    ref = resblock_ref(x, weight, bias)

    # 1) default auto-picked tiles (single block at this toy size)
    out = jax.block_until_ready(resblock(x, weight, bias))
    assert jnp.allclose(out, ref, atol=5e-3, rtol=5e-3), "mismatch (default tiles)"

    # 2) explicit small tiles to exercise the 2-D (M, N) grid path
    out2 = jax.block_until_ready(resblock(x, weight, bias, tm=8, tn=128))
    assert jnp.allclose(out2, ref, atol=5e-3, rtol=5e-3), "mismatch (tiled grid)"

    # 3) bf16 params/activations path (f32 MXU accumulation + f32 epilogue),
    #    matching how weights would be stored at load time in production.
    out3 = jax.block_until_ready(
        resblock(x.astype(jnp.bfloat16), weight.astype(jnp.bfloat16),
                 bias.astype(jnp.bfloat16)))
    assert jnp.allclose(out3.astype(jnp.float32), ref, atol=1e-1, rtol=1e-1), \
        "mismatch (bf16 path)"

    # reshape back to [batch, seq, hidden] (glue, outside the kernel)
    out_bsh = out.reshape(batch, seq, hidden)
    jax.block_until_ready(out_bsh)
    print("KERNEL_OK")
</pallas_src>

<mosaic_0001>
module attributes {stable_mosaic.version = 11 : i64} {
  func.func @resblock_kernel(%arg0: i32, %arg1: i32, %arg2: memref<16x256xf32, #tpu.memory_space<vmem>>, %arg3: memref<256x256xf32, #tpu.memory_space<vmem>>, %arg4: memref<1x256xf32, #tpu.memory_space<vmem>>, %arg5: memref<16x256xf32, #tpu.memory_space<vmem>>) attributes {dimension_semantics = [#tpu.dimension_semantics<parallel>, #tpu.dimension_semantics<parallel>], iteration_bounds = array<i64: 1, 1>, scalar_prefetch = 0 : i64, scratch_operands = 0 : i64, tpu.core_type = #tpu.core_type<tc>, window_params = [{transform_indices = @transform_0, window_bounds = array<i64: 16, 256>}, {transform_indices = @transform_1, window_bounds = array<i64: 256, 256>}, {transform_indices = @transform_2, window_bounds = array<i64: 1, 256>}, {transform_indices = @transform_3, window_bounds = array<i64: 16, 256>}]} {
    %c0 = arith.constant 0 : index
    %c0_0 = arith.constant 0 : index
    %0 = vector.load %arg2[%c0, %c0_0] : memref<16x256xf32, #tpu.memory_space<vmem>>, vector<16x256xf32>
    %c0_1 = arith.constant 0 : index
    %c0_2 = arith.constant 0 : index
    %1 = vector.load %arg3[%c0_1, %c0_2] : memref<256x256xf32, #tpu.memory_space<vmem>>, vector<256x256xf32>
    %cst = arith.constant dense<0.000000e+00> : vector<16x256xf32>
    %2 = tpu.matmul %0, %1, %cst {dimension_numbers = #tpu.dot_dimension_numbers<[1], [1], [0], [0], [0, 0, 1, 0], [], []>} : vector<16x256xf32>, vector<256x256xf32>, vector<16x256xf32> -> vector<16x256xf32>
    %c0_3 = arith.constant 0 : index
    %c0_4 = arith.constant 0 : index
    %3 = vector.load %arg4[%c0_3, %c0_4] : memref<1x256xf32, #tpu.memory_space<vmem>>, vector<1x256xf32>
    %4 = vector.broadcast %3 : vector<1x256xf32> to vector<16x256xf32>
    %5 = arith.addf %2, %4 : vector<16x256xf32>
    %cst_5 = arith.constant 0.000000e+00 : f32
    %6 = vector.broadcast %cst_5 : f32 to vector<16x256xf32>
    %7 = arith.subf %6, %5 : vector<16x256xf32>
    %8 = math.exp %7 : vector<16x256xf32>
    %cst_6 = arith.constant 1.000000e+00 : f32
    %9 = vector.broadcast %cst_6 : f32 to vector<16x256xf32>
    %10 = arith.addf %9, %8 : vector<16x256xf32>
    %11 = tpu.reciprocal %10 {approx = true} : vector<16x256xf32> -> vector<16x256xf32>
    %12 = arith.mulf %5, %11 : vector<16x256xf32>
    %c256_i32 = arith.constant 256 : i32
    %13 = arith.muli %arg1, %c256_i32 : i32
    %14 = tpu.assume_multiple %13, 128 : i32
    %c0_7 = arith.constant 0 : index
    %15 = arith.index_cast %14 : i32 to index
    %16 = vector.load %arg2[%c0_7, %15] : memref<16x256xf32, #tpu.memory_space<vmem>>, vector<16x256xf32>
    %17 = arith.addf %16, %12 : vector<16x256xf32>
    %c0_8 = arith.constant 0 : index
    %c0_9 = arith.constant 0 : index
    %18 = vector.load %arg5[%c0_8, %c0_9] : memref<16x256xf32, #tpu.memory_space<vmem>>, vector<16x256xf32>
    tpu.vector_store %arg5[%c0_8, %c0_9], %17 {strides = array<i32>} : memref<16x256xf32, #tpu.memory_space<vmem>>, vector<16x256xf32>,
    return
  }
  func.func @transform_0(%arg0: i32, %arg1: i32) -> (i32, i32) {
    %c0_i32 = arith.constant 0 : i32
    %c0_i32_0 = arith.constant 0 : i32
    return %arg0, %c0_i32 : i32, i32
  }
  func.func @transform_1(%arg0: i32, %arg1: i32) -> (i32, i32) {
    %c0_i32 = arith.constant 0 : i32
    %c0_i32_0 = arith.constant 0 : i32
    return %arg1, %c0_i32 : i32, i32
  }
  func.func @transform_2(%arg0: i32, %arg1: i32) -> (i32, i32) {
    %c0_i32 = arith.constant 0 : i32
    %c0_i32_0 = arith.constant 0 : i32
    return %c0_i32, %arg1 : i32, i32
  }
  func.func @transform_3(%arg0: i32, %arg1: i32) -> (i32, i32) {
    %c0_i32 = arith.constant 0 : i32
    return %arg0, %arg1 : i32, i32
  }
}

</mosaic_0001>

<bundles_post_ra>
// kernel: tpu_custom_call.1
= control target key start
LH: loop header
LB: loop body
LE: loop exit
PB: predicated region body
PF: predicated region fallthrough
CT: control target
= control target key end

     0   :  { %8 = vsyncpa [#allocation3], 0  ;;  %s531_s0 = inlined_call_operand.hbm [shape: f32[16,256], index: 0, kind: input, shape index: {}]   ;;  %s532_s1 = inlined_call_operand.hbm [shape: f32[256,256], index: 1, kind: input, shape index: {}]   ;;  %s533_s2 = inlined_call_operand.vmem [shape: f32[1,256], index: 2, kind: input, shape index: {}]   ;;  %s534_s3 = inlined_call_operand.hbm [shape: f32[16,256], index: 3, kind: output, shape index: {}]  }
   0x1   :  { %9 = vsyncpa [#allocation6], 0 }
   0x2   :  { %10 = vsyncpa [#allocation4], 0  ;;  %s450_s12 = smov [#allocation2]   ;;  %s378_s16 = scalar_lea.hbm %s531_s0, 512 }
   0x3   :  { %s16_s13 = sshll.u32 %s450_s12, 4  ;;  %p379_p0 = scmp.ne.s32.totalorder %s531_s0, %s378_s16  ;;  %s17_s13 = int_to_ptr.vmem [resolvable:$true] %s16_s13 }
   0x4   :  { %p382_p1 = scmp.lt.u32.totalorder %s378_s16, %s531_s0 }
   0x6   :  { %p384_p2 = pnand %p382_p1, %p379_p0 }
   0x8   :  { %387 = shalt.err (!%p384_p2)
}
   0x9   :  { %s388_s21 = scalar_lea.vmem %s17_s13, 512  ;;  %p393_p4 = scmp.lt.s32.totalorder %s17_s13, %s17_s13 }
   0xa   :  { %p389_p3 = scmp.ne.s32.totalorder %s17_s13, %s388_s21  ;;  %p394_p5 = scmp.lt.s32.totalorder %s388_s21, %s388_s21 }
   0xc   :  { %p395_p6 = por %p394_p5, %p393_p4 }
   0xe   :  { %p396_p7 = pnand %p395_p6, %p389_p3 }
  0x10   :  { %399 = shalt.err (!%p396_p7)
}
  0x11   :  { %s451_s22 = smov 256   ;;  %s452_s23 = smov 16  }
  0x12   :  { %22 = dma.hbm_to_vmem [thread:$0]  %s531_s0, 512, %s17_s13, [#allocation3], %s451_s22, %s451_s22, %s452_s23  }
  0x13   :  { %s453_s26 = smov [#allocation5]   ;;  %s400_s30 = scalar_lea.hbm %s532_s1, 8192 }
  0x14   :  { %s28_s27 = sshll.u32 %s453_s26, 4  ;;  %p401_p8 = scmp.ne.s32.totalorder %s532_s1, %s400_s30  ;;  %s29_s27 = int_to_ptr.vmem [resolvable:$true] %s28_s27 }
  0x15   :  { %p404_p9 = scmp.lt.u32.totalorder %s400_s30, %s532_s1 }
  0x17   :  { %p406_p10 = pnand %p404_p9, %p401_p8 }
  0x19   :  { %409 = shalt.err (!%p406_p10)
}
  0x1a   :  { %s410_s8 = scalar_lea.vmem %s29_s27, 8192  ;;  %p415_p12 = scmp.lt.s32.totalorder %s29_s27, %s29_s27 }
  0x1b   :  { %p411_p11 = scmp.ne.s32.totalorder %s29_s27, %s410_s8  ;;  %p416_p13 = scmp.lt.s32.totalorder %s410_s8, %s410_s8 }
  0x1d   :  { %p417_p0 = por %p416_p13, %p415_p12 }
  0x1f   :  { %p418_p1 = pnand %p417_p0, %p411_p11 }
  0x21   :  { %421 = shalt.err (!%p418_p1)
}
  0x22   :  { %34 = dma.hbm_to_vmem [thread:$0]  %s532_s1, 8192, %s29_s27, [#allocation6], %s451_s22, %s451_s22, %s452_s23  }
  0x23   :  { %444 = dma.done.wait [#allocation3], 512  }
  0x24   :  { %445 = vsyncadd [#allocation3], 4294966784 }
  0x25   :  { %446 = dma.done.wait [#allocation6], 8192  }
  0x26   :  { %447 = vsyncadd [#allocation6], 4294959104  ;;  %v48_v0 = vld [vmem:[#allocation5 + $0x8] sm:$0xff]  ;;  %v50_v1 = vld [vmem:[#allocation5 + $0x18] sm:$0xff] }
  0x27   :  { %v47_v2 = vld [vmem:[#allocation5] sm:$0xff]  ;;  %v261_v3 = vpack.c.bf16 %v50_v1, %v48_v0  ;;  %v49_v4 = vld [vmem:[#allocation5 + $0x10] sm:$0xff]  ;;  %v52_v5 = vld [vmem:[#allocation5 + $0x28] sm:$0xff] }
  0x28   :  { %v54_v6 = vld [vmem:[#allocation5 + $0x38] sm:$0xff]  ;;  %v263_v7 = vpack.c.bf16 %v49_v4, %v47_v2  ;;  %v51_v9 = vld [vmem:[#allocation5 + $0x20] sm:$0xff]  ;;  %v53_v10 = vld [vmem:[#allocation5 + $0x30] sm:$0xff] }
  0x29   :  { %v265_v8 = vpack.c.bf16 %v54_v6, %v52_v5  ;;  %262 = vmatprep.subr.bf16.mxu0 %v261_v3  ;;  %325 = vmatprep.subr.bf16.mxu1 %v261_v3  ;;  %v56_v11 = vld [vmem:[#allocation5 + $0x48] sm:$0xff]  ;;  %v58_v12 = vld [vmem:[#allocation5 + $0x58] sm:$0xff]  ;;  %v267_v13 = vpack.c.bf16 %v53_v10, %v51_v9  ;;  %v55_v15 = vld [vmem:[#allocation5 + $0x40] sm:$0xff] }
  0x2a   :  { %264 = vmatpush1.bf16.xpose.msra.mxu0 %v263_v7  ;;  %341 = vmatpush1.bf16.xpose.msra.mxu1 %v263_v7  ;;  %v269_v14 = vpack.c.bf16 %v58_v12, %v56_v11  ;;  %v57_v16 = vld [vmem:[#allocation5 + $0x50] sm:$0xff]  ;;  %v60_v17 = vld [vmem:[#allocation5 + $0x68] sm:$0xff]  ;;  %v62_v18 = vld [vmem:[#allocation5 + $0x78] sm:$0xff] }
  0x2b   :  { %266 = vmatprep.subr.bf16.mxu0 %v265_v8  ;;  %326 = vmatprep.subr.bf16.mxu1 %v265_v8  ;;  %v271_v19 = vpack.c.bf16 %v57_v16, %v55_v15  ;;  %v273_v20 = vpack.c.bf16 %v62_v18, %v60_v17  ;;  %v59_v21 = vld [vmem:[#allocation5 + $0x60] sm:$0xff]  ;;  %v61_v22 = vld [vmem:[#allocation5 + $0x70] sm:$0xff]  ;;  %v505_v23 = vld [vmem:[#allocation2 + $0x8] sm:$0xff] }
  0x2c   :  { %v507_v24 = vld [vmem:[#allocation2 + $0x18] sm:$0xff]  ;;  %v64_v25 = vld [vmem:[#allocation5 + $0x88] sm:$0xff]  ;;  %187 = vmatprep.mubr.f32.mxu0 %v505_v23  ;;  %v275_v27 = vpack.c.bf16 %v61_v22, %v59_v21  ;;  %v63_v29 = vld [vmem:[#allocation5 + $0x80] sm:$0xff] }
  0x2d   :  { %v66_v26 = vld [vmem:[#allocation5 + $0x98] sm:$0xff]  ;;  %193 = vmatprep.mubr.f32.mxu1 %v507_v24  ;;  %v65_v30 = vld [vmem:[#allocation5 + $0x90] sm:$0xff]  ;;  %v68_v31 = vld [vmem:[#allocation5 + $0xa8] sm:$0xff] }
  0x2e   :  { %v277_v28 = vpack.c.bf16 %v66_v26, %v64_v25  ;;  %v70_v32 = vld [vmem:[#allocation5 + $0xb8] sm:$0xff]  ;;  %v279_v33 = vpack.c.bf16 %v65_v30, %v63_v29  ;;  %v67_v35 = vld [vmem:[#allocation5 + $0xa0] sm:$0xff]  ;;  %v69_v36 = vld [vmem:[#allocation5 + $0xb0] sm:$0xff] }
  0x2f   :  { %v281_v34 = vpack.c.bf16 %v70_v32, %v68_v31  ;;  %v72_v37 = vld [vmem:[#allocation5 + $0xc8] sm:$0xff]  ;;  %v74_v38 = vld [vmem:[#allocation5 + $0xd8] sm:$0xff]  ;;  %v283_v39 = vpack.c.bf16 %v69_v36, %v67_v35  ;;  %v71_v41 = vld [vmem:[#allocation5 + $0xc0] sm:$0xff] }
  0x30   :  { %v285_v40 = vpack.c.bf16 %v74_v38, %v72_v37  ;;  %v73_v42 = vld [vmem:[#allocation5 + $0xd0] sm:$0xff]  ;;  %v76_v43 = vld [vmem:[#allocation5 + $0xe8] sm:$0xff]  ;;  %v78_v44 = vld [vmem:[#allocation5 + $0xf8] sm:$0xff]  ;;  %v113_v38 = vlaneseq }
  0x31   :  { %v287_v45 = vpack.c.bf16 %v73_v42, %v71_v41  ;;  %v289_v46 = vpack.c.bf16 %v78_v44, %v76_v43  ;;  %v75_v47 = vld [vmem:[#allocation5 + $0xe0] sm:$0xff]  ;;  %v77_v48 = vld [vmem:[#allocation5 + $0xf0] sm:$0xff]  ;;  %v80_v49 = vld [vmem:[#allocation5 + $0x108] sm:$0xff] }
  0x32   :  { %268 = vmatpush1.bf16.xpose.msra.mxu0 %v267_v13  ;;  %342 = vmatpush1.bf16.xpose.msra.mxu1 %v267_v13  ;;  %v82_v50 = vld [vmem:[#allocation5 + $0x118] sm:$0xff]  ;;  %v291_v51 = vpack.c.bf16 %v77_v48, %v75_v47  ;;  %v79_v53 = vld [vmem:[#allocation5 + $0x100] sm:$0xff]  ;;  %v81_v54 = vld [vmem:[#allocation5 + $0x110] sm:$0xff] }
  0x33   :  { %270 = vmatprep.subr.bf16.mxu0 %v269_v14  ;;  %327 = vmatprep.subr.bf16.mxu1 %v269_v14  ;;  %v293_v52 = vpack.c.bf16 %v82_v50, %v80_v49  ;;  %v84_v55 = vld [vmem:[#allocation5 + $0x128] sm:$0xff]  ;;  %v86_v56 = vld [vmem:[#allocation5 + $0x138] sm:$0xff]  ;;  %v295_v57 = vpack.c.bf16 %v81_v54, %v79_v53  ;;  %v83_v59 = vld [vmem:[#allocation5 + $0x120] sm:$0xff] }
  0x34   :  { %v297_v58 = vpack.c.bf16 %v86_v56, %v84_v55  ;;  %v85_v60 = vld [vmem:[#allocation5 + $0x130] sm:$0xff]  ;;  %v88_v61 = vld [vmem:[#allocation5 + $0x148] sm:$0xff]  ;;  %v90_v62 = vld [vmem:[#allocation5 + $0x158] sm:$0xff] }
  0x35   :  { %v299_v63 = vpack.c.bf16 %v85_v60, %v83_v59  ;;  %v301_v0 = vpack.c.bf16 %v90_v62, %v88_v61  ;;  %v87_v1 = vld [vmem:[#allocation5 + $0x140] sm:$0xff]  ;;  %v89_v2 = vld [vmem:[#allocation5 + $0x150] sm:$0xff]  ;;  %v92_v3 = vld [vmem:[#allocation5 + $0x168] sm:$0xff] }
  0x36   :  { %v94_v4 = vld [vmem:[#allocation5 + $0x178] sm:$0xff]  ;;  %v303_v5 = vpack.c.bf16 %v89_v2, %v87_v1  ;;  %v91_v7 = vld [vmem:[#allocation5 + $0x160] sm:$0xff]  ;;  %v93_v8 = vld [vmem:[#allocation5 + $0x170] sm:$0xff] }
  0x37   :  { %v305_v6 = vpack.c.bf16 %v94_v4, %v92_v3  ;;  %v96_v9 = vld [vmem:[#allocation5 + $0x188] sm:$0xff]  ;;  %v98_v10 = vld [vmem:[#allocation5 + $0x198] sm:$0xff]  ;;  %v307_v11 = vpack.c.bf16 %v93_v8, %v91_v7  ;;  %v95_v13 = vld [vmem:[#allocation5 + $0x180] sm:$0xff] }
  0x38   :  { %v309_v12 = vpack.c.bf16 %v98_v10, %v96_v9  ;;  %v97_v14 = vld [vmem:[#allocation5 + $0x190] sm:$0xff]  ;;  %v100_v15 = vld [vmem:[#allocation5 + $0x1a8] sm:$0xff]  ;;  %v102_v16 = vld [vmem:[#allocation5 + $0x1b8] sm:$0xff] }
  0x39   :  { %v311_v17 = vpack.c.bf16 %v97_v14, %v95_v13  ;;  %v313_v18 = vpack.c.bf16 %v102_v16, %v100_v15  ;;  %v104_v21 = vld [vmem:[#allocation5 + $0x1c8] sm:$0xff]  ;;  %v106_v22 = vld [vmem:[#allocation5 + $0x1d8] sm:$0xff]  ;;  %v43_v36 = vld [vmem:[#allocation2] sm:$0xff] }
  0x3a   :  { %272 = vmatpush1.bf16.xpose.msra.mxu0 %v271_v19  ;;  %343 = vmatpush1.bf16.xpose.msra.mxu1 %v271_v19  ;;  %v99_v19 = vld [vmem:[#allocation5 + $0x1a0] sm:$0xff]  ;;  %v317_v26 = vpack.c.bf16 %v106_v22, %v104_v21  ;;  %v108_v29 = vld [vmem:[#allocation5 + $0x1e8] sm:$0xff]  ;;  %v110_v30 = vld [vmem:[#allocation5 + $0x1f8] sm:$0xff] }
  0x3b   :  { %274 = vmatprep.subr.bf16.mxu0 %v273_v20  ;;  %328 = vmatprep.subr.bf16.mxu1 %v273_v20  ;;  %v101_v20 = vld [vmem:[#allocation5 + $0x1b0] sm:$0xff]  ;;  %v321_v32 = vpack.c.bf16 %v110_v30, %v108_v29  ;;  %v111_v41 = vld [vmem:[%s533_s2] sm:$0x3]  ;;  %s454_s2 = smov [#allocation7]  }
  0x3c   :  { %v315_v25 = vpack.c.bf16 %v101_v20, %v99_v19  ;;  %v45_v37 = vld [vmem:[#allocation2 + $0x10] sm:$0xff]  ;;  %s246_s11 = sshll.u32 %s454_s2, 4  ;;  %s247_s11 = int_to_ptr.vmem [resolvable:$true] %s246_s11 }
  0x3d   :  { %s422_s12 = scalar_lea.vmem %s247_s11, 512  ;;  %p427_p3 = scmp.lt.s32.totalorder %s247_s11, %s247_s11 }
  0x3e   :  { %p423_p2 = scmp.ne.s32.totalorder %s247_s11, %s422_s12  ;;  %p428_p4 = scmp.lt.s32.totalorder %s422_s12, %s422_s12 }
  0x40   :  { %p429_p5 = por %p428_p4, %p427_p3 }
  0x42   :  { %276 = vmatpush1.bf16.xpose.msra.mxu0 %v275_v27  ;;  %344 = vmatpush1.bf16.xpose.msra.mxu1 %v275_v27  ;;  %v103_v27 = vld [vmem:[#allocation5 + $0x1c0] sm:$0xff]  ;;  %p430_p6 = pnand %p429_p5, %p423_p2 }
  0x43   :  { %278 = vmatprep.subr.bf16.mxu0 %v277_v28  ;;  %329 = vmatprep.subr.bf16.mxu1 %v277_v28  ;;  %v105_v28 = vld [vmem:[#allocation5 + $0x1d0] sm:$0xff] }
  0x44   :  { %v319_v31 = vpack.c.bf16 %v105_v28, %v103_v27 }
  0x4a   :  { %280 = vmatpush1.bf16.xpose.msra.mxu0 %v279_v33  ;;  %345 = vmatpush1.bf16.xpose.msra.mxu1 %v279_v33  ;;  %v107_v33 = vld [vmem:[#allocation5 + $0x1e0] sm:$0xff] }
  0x4b   :  { %282 = vmatprep.subr.bf16.mxu0 %v281_v34  ;;  %330 = vmatprep.subr.bf16.mxu1 %v281_v34  ;;  %v109_v34 = vld [vmem:[#allocation5 + $0x1f0] sm:$0xff] }
  0x4c   :  { %v323_v35 = vpack.c.bf16 %v109_v34, %v107_v33 }
  0x52   :  { %284 = vmatpush1.bf16.xpose.msra.mxu0 %v283_v39  ;;  %346 = vmatpush1.bf16.xpose.msra.mxu1 %v283_v39  ;;  %v114_v39 = vshrl.u32 %v113_v38, 7 }
  0x53   :  { %286 = vmatprep.subr.bf16.mxu0 %v285_v40  ;;  %331 = vmatprep.subr.bf16.mxu1 %v285_v40 }
  0x54   :  { %v115_v40 = vsub.s32 0, %v114_v39  ;;  %v119_v42 = vsub.s32 1, %v114_v39 }
  0x56   :  { %v116_v43 = vrot.slane %v111_v41, %v115_v40  ;;  %v120_v44 = vrot.slane %v111_v41, %v119_v42 }
  0x5a   :  { %288 = vmatpush1.bf16.xpose.msra.mxu0 %v287_v45  ;;  %347 = vmatpush1.bf16.xpose.msra.mxu1 %v287_v45 }
  0x5b   :  { %290 = vmatprep.subr.bf16.mxu0 %v289_v46  ;;  %332 = vmatprep.subr.bf16.mxu1 %v289_v46 }
  0x62   :  { %292 = vmatpush1.bf16.xpose.msra.mxu0 %v291_v51  ;;  %348 = vmatpush1.bf16.xpose.msra.mxu1 %v291_v51 }
  0x63   :  { %294 = vmatprep.subr.bf16.mxu0 %v293_v52  ;;  %333 = vmatprep.subr.bf16.mxu1 %v293_v52 }
  0x6a   :  { %296 = vmatpush1.bf16.xpose.msra.mxu0 %v295_v57  ;;  %349 = vmatpush1.bf16.xpose.msra.mxu1 %v295_v57 }
  0x6b   :  { %298 = vmatprep.subr.bf16.mxu0 %v297_v58  ;;  %334 = vmatprep.subr.bf16.mxu1 %v297_v58 }
  0x72   :  { %300 = vmatpush1.bf16.xpose.msra.mxu0 %v299_v63  ;;  %350 = vmatpush1.bf16.xpose.msra.mxu1 %v299_v63 }
  0x73   :  { %302 = vmatprep.subr.bf16.mxu0 %v301_v0  ;;  %335 = vmatprep.subr.bf16.mxu1 %v301_v0 }
  0x7a   :  { %304 = vmatpush1.bf16.xpose.msra.mxu0 %v303_v5  ;;  %351 = vmatpush1.bf16.xpose.msra.mxu1 %v303_v5 }
  0x7b   :  { %306 = vmatprep.subr.bf16.mxu0 %v305_v6  ;;  %336 = vmatprep.subr.bf16.mxu1 %v305_v6 }
  0x82   :  { %308 = vmatpush1.bf16.xpose.msra.mxu0 %v307_v11  ;;  %352 = vmatpush1.bf16.xpose.msra.mxu1 %v307_v11 }
  0x83   :  { %310 = vmatprep.subr.bf16.mxu0 %v309_v12  ;;  %337 = vmatprep.subr.bf16.mxu1 %v309_v12 }
  0x8a   :  { %312 = vmatpush1.bf16.xpose.msra.mxu0 %v311_v17  ;;  %353 = vmatpush1.bf16.xpose.msra.mxu1 %v311_v17 }
  0x8b   :  { %314 = vmatprep.subr.bf16.mxu0 %v313_v18  ;;  %338 = vmatprep.subr.bf16.mxu1 %v313_v18 }
  0x92   :  { %316 = vmatpush1.bf16.xpose.msra.mxu0 %v315_v25  ;;  %354 = vmatpush1.bf16.xpose.msra.mxu1 %v315_v25 }
  0x93   :  { %318 = vmatprep.subr.bf16.mxu0 %v317_v26  ;;  %339 = vmatprep.subr.bf16.mxu1 %v317_v26 }
  0x9a   :  { %320 = vmatpush1.bf16.xpose.msra.mxu0 %v319_v31  ;;  %355 = vmatpush1.bf16.xpose.msra.mxu1 %v319_v31 }
  0x9b   :  { %322 = vmatprep.subr.bf16.mxu0 %v321_v32  ;;  %340 = vmatprep.subr.bf16.mxu1 %v321_v32 }
  0xa2   :  { %324 = vmatpush1.bf16.xpose.msra.mxu0 %v323_v35  ;;  %356 = vmatpush1.bf16.xpose.msra.mxu1 %v323_v35 }
  0xa9   :  { %188 = vmatmul.mubr.f32.vlgmr.msra.gmra.mrb[0].mxu0 %v43_v36  ;;  %194 = vmatmul.mubr.f32.vlgmr.msra.gmra.mrb[0].mxu1 %v45_v37 }
 0x17c   :  { %v189_v45 = vpop.f32.mrb[0].mxu0  ;;  %v195_v46 = vpop.f32.mrb[0].mxu1 }
 0x17d   :  { %v190_v47 = vadd.f32 %v189_v45, %v116_v43  ;;  %v196_v48 = vadd.f32 %v195_v46, %v116_v43  ;;  %v191_v49 = vpop.f32.mrb[1].mxu0  ;;  %v197_v50 = vpop.f32.mrb[1].mxu1 }
 0x17e   :  { %v192_v51 = vadd.f32 %v191_v49, %v120_v44  ;;  %v198_v52 = vadd.f32 %v197_v50, %v120_v44 }
 0x17f   :  { %v200_v53 = vsub.f32 0.0, %v190_v47  ;;  %v202_v54 = vsub.f32 0.0, %v196_v48 }
 0x180   :  { %v201_v55 = vsub.f32 0.0, %v192_v51  ;;  %v203_v56 = vsub.f32 0.0, %v198_v52 }
 0x181   :  { %v204_v57 = vmul.f32 1.442695, %v200_v53  ;;  %v208_v58 = vmul.f32 1.442695, %v202_v54 }
 0x182   :  { %v206_v59 = vmul.f32 1.442695, %v201_v55  ;;  %v210_v60 = vmul.f32 1.442695, %v203_v56 }
 0x183   :  { %362 = vpow2.f32 %v204_v57 }
 0x184   :  { %364 = vpow2.f32 %v208_v58 }
 0x185   :  { %366 = vpow2.f32 %v206_v59 }
 0x186   :  { %368 = vpow2.f32 %v210_v60 }
 0x18d   :  { %v363_v61 = vpop.eup %362 }
 0x18e   :  { %v365_v62 = vpop.eup %364  ;;  %v212_v63 = vadd.f32 1.0, %v363_v61 }
 0x18f   :  { %v367_v0 = vpop.eup %366  ;;  %v214_v1 = vadd.f32 1.0, %v365_v62 }
 0x190   :  { %v369_v2 = vpop.eup %368  ;;  %370 = vrcp.f32 %v212_v63  ;;  %v213_v3 = vadd.f32 1.0, %v367_v0 }
 0x191   :  { %372 = vrcp.f32 %v214_v1  ;;  %v215_v4 = vadd.f32 1.0, %v369_v2 }
 0x192   :  { %374 = vrcp.f32 %v213_v3 }
 0x193   :  { %376 = vrcp.f32 %v215_v4 }
 0x19a   :  { %v371_v5 = vpop.eup %370 }
 0x19b   :  { %v373_v6 = vpop.eup %372  ;;  %v220_v7 = vmul.f32 %v371_v5, %v190_v47 }
 0x19c   :  { %v375_v8 = vpop.eup %374  ;;  %v222_v9 = vmul.f32 %v373_v6, %v196_v48 }
 0x19d   :  { %v377_v10 = vpop.eup %376  ;;  %v233_v11 = vadd.f32 %v220_v7, %v43_v36  ;;  %v221_v12 = vmul.f32 %v375_v8, %v192_v51 }
 0x19e   :  { %v235_v13 = vadd.f32 %v222_v9, %v45_v37  ;;  %v223_v14 = vmul.f32 %v377_v10, %v198_v52 }
 0x19f   :  { %237 = vst [vmem:[#allocation7] sm:$0xff] %v233_v11  ;;  %v234_v15 = vadd.f32 %v221_v12, %v505_v23 }
 0x1a0   :  { %239 = vst [vmem:[#allocation7 + $0x10] sm:$0xff] %v235_v13  ;;  %v236_v16 = vadd.f32 %v223_v14, %v507_v24 }
 0x1a1   :  { %238 = vst [vmem:[#allocation7 + $0x8] sm:$0xff] %v234_v15 }
 0x1a2   :  { %240 = vst [vmem:[#allocation7 + $0x18] sm:$0xff] %v236_v16 }
 0x1a3   :  { %433 = shalt.err (!%p430_p6)
}
 0x1a4   :  { %s434_s15 = scalar_lea.hbm %s534_s3, 512 }
 0x1a5   :  { %p435_p7 = scmp.ne.s32.totalorder %s534_s3, %s434_s15  ;;  %p438_p8 = scmp.lt.u32.totalorder %s434_s15, %s534_s3 }
 0x1a7   :  { %p440_p9 = pnand %p438_p8, %p435_p7 }
 0x1a9   :  { %443 = shalt.err (!%p440_p9)
}
 0x1aa   :  { %252 = dma.vmem_to_hbm [thread:$0]  %s247_s11, 512, %s534_s3, [#allocation4], %s451_s22, %s451_s22, %s452_s23  }
 0x1ab   :  { %448 = dma.done.wait [#allocation4], 512  }
 0x1ac   :  { %449 = vsyncadd [#allocation4], 4294966784 }
 0x1ad   :  { %256 = vsyncpa [#allocation3], 1 }
 0x1ae   :  { %257 = vsyncpa [#allocation6], 1 }
 0x1af   :  { %258 = vsyncpa [#allocation4], 1 }

</bundles_post_ra>
